<compile_context>
chip_gen: v7x
topology: tpu7x:2x2x1
jax: 0.10.0
libtpu: 0.0.40
codegen_flags: <defaults>
</compile_context>

<pallas_src>
import functools

import jax
import jax.numpy as jnp
from jax.experimental import pallas as pl
from jax.experimental.pallas import tpu as pltpu


def _sgc_linear_kernel(x_ref, w_ref, b_ref, o_ref, *, compute_dtype):
    # x_ref: [tile_m, nfeat] (native dtype, streamed)
    # w_ref: [nfeat, n_pad]  (compute dtype, resident, already transposed + padded)
    # b_ref: [1, n_pad]      (f32, resident)
    # Cast x on the VPU (free vs. the HBM stream), contract on the MXU in f32.
    x = x_ref[...].astype(compute_dtype)
    acc = jnp.dot(x, w_ref[...], preferred_element_type=jnp.float32)
    o_ref[...] = (acc + b_ref[...]).astype(o_ref.dtype)


def _tpu_generation_params():
    """Return (vmem_budget_bytes, vmem_limit_bytes, min_grid_steps) per generation."""
    vmem_phys = None
    try:
        vmem_phys = int(pltpu.get_tpu_info().vmem_capacity_bytes)
    except Exception:
        vmem_phys = None
    if vmem_phys is None:
        # Conservative fallback sized for the smallest (v7x, 64 MiB) VMEM.
        vmem_phys = 64 * 1024 * 1024
    if vmem_phys >= 100 * 1024 * 1024:
        # v5e / v6e: 128 MiB physical VMEM, single TensorCore per chip.
        # Allow a single resident block (the grid is a serial loop there).
        return 80 * 1024 * 1024, 100 * 1024 * 1024, 1
    # v7x: 64 MiB physical VMEM per TC, 2 TensorCores (megacore): require >= 4
    # parallel steps so both cores stay busy, with headroom under the limit.
    return 40 * 1024 * 1024, 48 * 1024 * 1024, 4


def _choose_tile_m(N, nfeat, n_pad, x_bytes, w_bytes, out_bytes,
                   vmem_budget, min_grid_steps):
    """Largest row tile of x that fits the generation's VMEM budget while giving
    at least `min_grid_steps` grid steps (megacore balance on v7x)."""

    def footprint(tm):
        x_buf = 2 * tm * nfeat * x_bytes        # streamed x tile, double-buffered
        w_buf = 2 * nfeat * n_pad * w_bytes     # resident W^T (counted conservatively)
        b_buf = 2 * n_pad * 4                   # resident bias (f32)
        o_buf = 2 * tm * n_pad * out_bytes      # output tile, double-buffered
        return x_buf + w_buf + b_buf + o_buf

    # Single resident block (no per-step pipelining overhead) when allowed.
    if min_grid_steps <= 1 and footprint(N) <= vmem_budget:
        return N

    for tm in (8192, 4096, 2048, 1024, 512, 256, 128, 64, 32, 16):
        if footprint(tm) > vmem_budget:
            continue
        if pl.cdiv(N, tm) >= min_grid_steps:
            return tm
    # Floor: 16 rows (sublane-friendly) or the full (tiny) array.
    return 16 if N >= 16 else N


def sgc_forward(x, weight, bias, *, tile_m=None,
                compute_dtype=jnp.bfloat16, out_dtype=None):
    """SGC forward: y = x @ W.T + b.

    x: [N, nfeat]; weight: [nclass, nfeat] (PyTorch nn.Linear layout); bias: [nclass].
    """
    N, nfeat = x.shape
    nclass, nfeat_w = weight.shape
    assert nfeat_w == nfeat, "weight must be [nclass, nfeat]"
    out_dtype = out_dtype or x.dtype

    # Lane-dense padded class width (multiple of 128 lanes).
    n_pad = max(128, ((nclass + 127) // 128) * 128)

    # One-time tiny prep (negligible vs. the x stream): transpose W to the natural
    # [K, N] MXU feed, zero-pad the class dim, cast to the MXU compute dtype.
    w_t = jnp.transpose(weight).astype(compute_dtype)                  # [nfeat, nclass]
    w_t = jnp.pad(w_t, ((0, 0), (0, n_pad - nclass)))                  # [nfeat, n_pad]
    b_pad = jnp.pad(bias.astype(jnp.float32),
                    (0, n_pad - nclass)).reshape(1, n_pad)             # [1, n_pad] f32

    vmem_budget, vmem_limit, min_grid_steps = _tpu_generation_params()
    x_bytes = jnp.dtype(x.dtype).itemsize          # x streamed at native dtype
    w_bytes = jnp.dtype(compute_dtype).itemsize
    out_bytes = jnp.dtype(out_dtype).itemsize
    if tile_m is None:
        tile_m = _choose_tile_m(N, nfeat, n_pad, x_bytes, w_bytes, out_bytes,
                                vmem_budget, min_grid_steps)

    grid = (pl.cdiv(N, tile_m),)   # ragged last tile: padded reads, masked writes

    y_pad = pl.pallas_call(
        functools.partial(_sgc_linear_kernel, compute_dtype=compute_dtype),
        out_shape=jax.ShapeDtypeStruct((N, n_pad), out_dtype),
        grid_spec=pltpu.PrefetchScalarGridSpec(
            num_scalar_prefetch=0,
            grid=grid,
            in_specs=[
                pl.BlockSpec((tile_m, nfeat), lambda i: (i, 0)),   # streamed x tile
                pl.BlockSpec((nfeat, n_pad), lambda i: (0, 0)),    # resident W^T (padded)
                pl.BlockSpec((1, n_pad), lambda i: (0, 0)),        # resident bias (padded)
            ],
            out_specs=pl.BlockSpec((tile_m, n_pad), lambda i: (i, 0)),
        ),
        compiler_params=pltpu.CompilerParams(
            dimension_semantics=("parallel",),      # megacore sharding on v7x
            vmem_limit_bytes=vmem_limit,            # generation-aware scoped limit
        ),
    )(x, w_t, b_pad)

    # Drop the lane-padding columns (tiny op on a tiny output).
    return y_pad[:, :nclass]


if __name__ == "__main__":
    # Small, deterministic setup consistent with SGC(nfeat, nclass).
    N, nfeat, nclass = 128, 64, 32
    key = jax.random.PRNGKey(0)
    kx, kw, kb = jax.random.split(key, 3)

    x = jax.random.normal(kx, (N, nfeat), dtype=jnp.float32)

    # nn.Linear default init: U(-1/sqrt(nfeat), 1/sqrt(nfeat)) for weight & bias.
    bound = 1.0 / (nfeat ** 0.5)
    weight = jax.random.uniform(kw, (nclass, nfeat), jnp.float32, -bound, bound)
    bias = jax.random.uniform(kb, (nclass,), jnp.float32, -bound, bound)

    y = sgc_forward(x, weight, bias)
    y = jax.block_until_ready(y)
    assert y.shape == (N, nclass)
    assert y.dtype == x.dtype

    # Exact-math reference for the kernel (bf16 operands, f32 accumulation).
    x_bf = x.astype(jnp.bfloat16).astype(jnp.float32)
    w_bf = weight.astype(jnp.bfloat16).astype(jnp.float32)
    y_ref = jnp.dot(x_bf, w_bf.T, precision=jax.lax.Precision.HIGHEST) + bias
    assert jnp.allclose(y, y_ref, atol=1e-3, rtol=1e-3)

    # Sanity vs full-f32 nn.Linear math (within bf16 rounding tolerance).
    y_f32 = jnp.dot(x, weight.T, precision=jax.lax.Precision.HIGHEST) + bias
    assert jnp.allclose(y, y_f32, atol=5e-2, rtol=5e-2)

    print("KERNEL_OK")
</pallas_src>

<mosaic_0001>
module attributes {stable_mosaic.version = 11 : i64} {
  func.func @_sgc_linear_kernel(%arg0: i32, %arg1: memref<32x64xf32, #tpu.memory_space<vmem>>, %arg2: memref<64x128xbf16, #tpu.memory_space<vmem>>, %arg3: memref<1x128xf32, #tpu.memory_space<vmem>>, %arg4: memref<32x128xf32, #tpu.memory_space<vmem>>) attributes {dimension_semantics = [#tpu.dimension_semantics<parallel>], iteration_bounds = array<i64: 4>, scalar_prefetch = 0 : i64, scratch_operands = 0 : i64, tpu.core_type = #tpu.core_type<tc>, window_params = [{transform_indices = @transform_0, window_bounds = array<i64: 32, 64>}, {pipeline_mode = #tpu.pipeline_mode<synchronous>, transform_indices = @transform_1, window_bounds = array<i64: 64, 128>}, {pipeline_mode = #tpu.pipeline_mode<synchronous>, transform_indices = @transform_2, window_bounds = array<i64: 1, 128>}, {transform_indices = @transform_3, window_bounds = array<i64: 32, 128>}]} {
    %c0 = arith.constant 0 : index
    %c0_0 = arith.constant 0 : index
    %0 = vector.load %arg1[%c0, %c0_0] : memref<32x64xf32, #tpu.memory_space<vmem>>, vector<32x64xf32>
    %1 = arith.truncf %0 : vector<32x64xf32> to vector<32x64xbf16>
    %c0_1 = arith.constant 0 : index
    %c0_2 = arith.constant 0 : index
    %2 = vector.load %arg2[%c0_1, %c0_2] : memref<64x128xbf16, #tpu.memory_space<vmem>>, vector<64x128xbf16>
    %cst = arith.constant dense<0.000000e+00> : vector<32x128xf32>
    %3 = tpu.matmul %1, %2, %cst {dimension_numbers = #tpu.dot_dimension_numbers<[1], [0], [0], [1], [0, 0, 1, 1], [], []>} : vector<32x64xbf16>, vector<64x128xbf16>, vector<32x128xf32> -> vector<32x128xf32>
    %c0_3 = arith.constant 0 : index
    %c0_4 = arith.constant 0 : index
    %4 = vector.load %arg3[%c0_3, %c0_4] : memref<1x128xf32, #tpu.memory_space<vmem>>, vector<1x128xf32>
    %5 = vector.broadcast %4 : vector<1x128xf32> to vector<32x128xf32>
    %6 = arith.addf %3, %5 : vector<32x128xf32>
    %c0_5 = arith.constant 0 : index
    %c0_6 = arith.constant 0 : index
    %7 = vector.load %arg4[%c0_5, %c0_6] : memref<32x128xf32, #tpu.memory_space<vmem>>, vector<32x128xf32>
    tpu.vector_store %arg4[%c0_5, %c0_6], %6 {strides = array<i32>} : memref<32x128xf32, #tpu.memory_space<vmem>>, vector<32x128xf32>,
    return
  }
  func.func @transform_0(%arg0: i32) -> (i32, i32) {
    %c0_i32 = arith.constant 0 : i32
    %c0_i32_0 = arith.constant 0 : i32
    return %arg0, %c0_i32 : i32, i32
  }
  func.func @transform_1(%arg0: i32) -> (i32, i32) {
    %c0_i32 = arith.constant 0 : i32
    %c0_i32_0 = arith.constant 0 : i32
    %c0_i32_1 = arith.constant 0 : i32
    return %c0_i32, %c0_i32_0 : i32, i32
  }
  func.func @transform_2(%arg0: i32) -> (i32, i32) {
    %c0_i32 = arith.constant 0 : i32
    %c0_i32_0 = arith.constant 0 : i32
    %c0_i32_1 = arith.constant 0 : i32
    return %c0_i32, %c0_i32_0 : i32, i32
  }
  func.func @transform_3(%arg0: i32) -> (i32, i32) {
    %c0_i32 = arith.constant 0 : i32
    %c0_i32_0 = arith.constant 0 : i32
    return %arg0, %c0_i32 : i32, i32
  }
}

</mosaic_0001>

<bundles_post_ra>
// kernel: tpu_custom_call.1
= control target key start
LH: loop header
LB: loop body
LE: loop exit
PB: predicated region body
PF: predicated region fallthrough
CT: control target
= control target key end

     0   :  { %8 = vsyncpa [#allocation3], 0  ;;  %s641_s0 = inlined_call_operand.vmem [shape: f32[128,64], index: 0, kind: input, shape index: {}]   ;;  %s642_s1 = inlined_call_operand.vmem [shape: bf16[64,128], index: 1, kind: input, shape index: {}]   ;;  %s643_s2 = inlined_call_operand.vmem [shape: f32[1,128], index: 2, kind: input, shape index: {}]   ;;  %s644_s3 = inlined_call_operand.hbm [shape: f32[128,128], index: 3, kind: output, shape index: {}]  }
   0x1   :  { %10 = vsyncpa [#allocation3 + $0x1], 0  ;;  %s524_s12 = smov 0   ;;  %s526_s13 = smov 0  }
   0x2   :  { %s528_s14 = smov 0   ;;  %s530_s15 = smov 0  }
   0x3 LB: > { %s545_s16 = sadd.s32 4294967295, %s499_s15   ;;  %s354_s17 = sadd.s32 4294967294, %s499_s15   ;;  %s499_s15 = sphi %s530_s15, %s650_s15   ;;  %s495_s14 = sphi %s528_s14, %s649_s14   ;;  %s491_s13 = sphi %s526_s13, %s648_s13   ;;  %s487_s12 = sphi %s524_s12, %s647_s12  }
   0x4   : > { %s549_s18 = sadd.s32 1, %s499_s15   ;;  %s91_s19 = sadd.s32 1, %s495_s14 }
   0x5   : > { %s88_s20 = ssub.s32 %s499_s15, %s549_s18  ;;  %p101_p0 = scmp.ne.s32.totalorder %s495_s14, %s491_s13 }
   0x6   : > { %p89_p1 = scmp.eq.s32.totalorder %s88_s20, 0  ;;  %p102_p2 = scmp.eq.s32.totalorder %s545_s16, 3 }
   0x7   : > { %p107_p3 = scmp.ne.s32.totalorder %s491_s13, %s487_s12  ;;  %p108_p4 = scmp.eq.s32.totalorder %s354_s17, 3 }
   0x8   : > { %s560_s21 = scalar_select %p89_p1, %s495_s14, %s91_s19  }
   0x9   : > { %p562_p5 = por %p102_p2, %p101_p0  ;;  %p566_p6 = por %p108_p4, %p107_p3 }
   0xa   : > { %p357_p7 = scmp.ge.s32.totalorder %s499_s15, 1  ;;  %p141_p8 = scmp.lt.s32.totalorder %s499_s15, 5 }
   0xc   : > { %p142_p9 = pnand %p357_p7, %p141_p8 }
   0xd   : > { %v433_v0 = vld [vmem:[%s642_s1] sm:$0xff] (!%p142_p9)   ;;  %s359_s26 = sshll.u32 (!%p142_p9), %s545_s16, 2  ;;  %v434_v1 = vld [vmem:[%s642_s1 + $0x8] sm:$0xff] (!%p142_p9)   ;;  %v435_v2 = vld [vmem:[%s642_s1 + $0x10] sm:$0xff] (!%p142_p9)   ;;  %vm218_vm0 = vcmask (!%p142_p9), 523264   ;;  %s162_s10 = sand.u32 (!%p142_p9), 1, %s491_s13  }
   0xe   : > { %145 = sbr.rel (%p142_p9) target bundleno = 262 (0x106), region = 32  ;;  %p166_p10 = scmp.lt.s32.totalorder (!%p142_p9), %s359_s26, 15  ;;  %380 = vmatprep.subr.bf16.mxu0 (!%p142_p9), %v433_v0  ;;  %v436_v5 = vld [vmem:[%s642_s1 + $0x18] sm:$0xff] (!%p142_p9)   ;;  %v361_v10 = vld [vmem:[%s643_s2] ss:$0 sm:$0xff] (!%p142_p9) }
   0xf   : > { %381 = vmatpush3.bf16.msra.mxu0 (!%p142_p9), %v433_v0  ;;  %s358_s11 = sshll.u32 (!%p142_p9), %s162_s10, 5  ;;  %s373_s25 = sshll.u32 (!%p142_p9), %s545_s16, 9 }
  0x10   : > { %382 = vmatprep.subr.bf16.mxu0 (!%p142_p9), %v434_v1  ;;  %s164_s20 = scalar_lea.vmem (!%p142_p9), [#allocation2], %s358_s11  ;;  %s598_s28 = scalar_lea.hbm (!%p142_p9), %s644_s3, %s373_s25 }
  0x11   : > { %s292_s24 = sshll.u32 (!%p142_p9), %s164_s20, 4  ;;  %s600_s16 = scalar_lea.sflag (!%p142_p9), [#allocation3], %s162_s10  ;;  %s593_s24 = int_to_ptr.vmem [resolvable:$true] %s292_s24 }
  0x12   : > { %s437_s29 = scalar_lea.vmem (!%p142_p9), %s593_s24, 512  ;;  %s501_s30 = smov (!%p142_p9), [#allocation2]  }
  0x13   : > { %383 = vmatpush3.bf16.msra.mxu0 (!%p142_p9), %v434_v1  ;;  %p438_p11 = scmp.ne.s32.totalorder (!%p142_p9), %s593_s24, %s437_s29 }
  0x14   : > { %384 = vmatprep.subr.bf16.mxu0 (!%p142_p9), %v435_v2 }
  0x15   : > { %s652_s26 = smov (!%p166_p10, %s359_s26), 15  ;;  %p439_p12 = pnand %p438_p11, %p562_p5 }
  0x16   : > { %s360_s4 = sshll.u32 %s652_s26, 3 }
  0x17   : > { %s169_s7 = scalar_lea.vmem %s641_s0, %s360_s4  ;;  %385 = vmatpush3.bf16.msra.mxu0 %v435_v2  ;;  %p440_p13 = pneg %p439_p12 }
  0x18   : > { %v173_v3 = vld [vmem:[%s169_s7] sm:$0xff]  ;;  %v174_v4 = vld [vmem:[%s169_s7 + $0x8] sm:$0xff]  ;;  %v175_v7 = vld [vmem:[%s169_s7 + $0x10] sm:$0xff]  ;;  %386 = vmatprep.subr.bf16.mxu0 %v436_v5  ;;  %s441_s4 = sshll.u32 %s501_s30, 4  ;;  %s442_s4 = int_to_ptr.vmem [resolvable:$false] %s441_s4 }
  0x19   : > { %v177_v6 = vpack.c.bf16 %v174_v4, %v173_v3  ;;  %v176_v8 = vld [vmem:[%s169_s7 + $0x18] sm:$0xff]  ;;  %s443_s5 = scalar_lea.vmem %s442_s4, 1024  ;;  %p444_p0 = scmp.lt.s32.totalorder %s593_s24, %s442_s4 }
  0x1a   : > { %v178_v9 = vpack.c.bf16 %v176_v8, %v175_v7  ;;  %p445_p1 = scmp.lt.s32.totalorder %s443_s5, %s437_s29 }
  0x1b   : > { %388 = vmatprep.mubr.msk.bf16.mxu0 %vm218_vm0, %v177_v6  ;;  %387 = vmatpush3.bf16.msra.mxu0 %v436_v5 }
  0x1c   : > { %p446_p2 = por %p445_p1, %p444_p0 }
  0x1e   : > { %389 = vmatmul.mubr.msk.bf16.vlgmr.msra.gmra.mrb[0].mxu0 %vm218_vm0, %v178_v9  ;;  %p447_p3 = pnand %p446_p2, %p440_p13 }
  0xf1   : > { %v390_v11 = vpop.f32.mrb[0].mxu0 }
  0xf2   : > { %v268_v12 = vadd.f32 %v390_v11, %v361_v10  ;;  %v259_v13 = vpop.f32.mrb[1].mxu0 }
  0xf3   : > { %v260_v14 = vadd.f32 %v361_v10, %v259_v13  ;;  %v391_v15 = vpop.f32.mrb[2].mxu0 }
  0xf4   : > { %276 = vst [vmem:[%s164_s20 + $0x10] sm:$0xff] %v268_v12  ;;  %v271_v16 = vadd.f32 %v391_v15, %v361_v10  ;;  %v262_v17 = vpop.f32.mrb[3].mxu0 }
  0xf5   : > { %274 = vst [vmem:[%s164_s20] sm:$0xff] %v260_v14  ;;  %v263_v18 = vadd.f32 %v361_v10, %v262_v17 }
  0xf6   : > { %277 = vst [vmem:[%s164_s20 + $0x18] sm:$0xff] %v271_v16 }
  0xf7   : > { %275 = vst [vmem:[%s164_s20 + $0x8] sm:$0xff] %v263_v18 }
  0xf8   : > { %450 = shalt.err (!%p447_p3)
}
  0xf9   : > { %s451_s6 = scalar_lea.hbm %s598_s28, 512  ;;  %s455_s9 = scalar_lea.hbm %s644_s3, 2048 }
  0xfa   : > { %p452_p4 = scmp.ne.s32.totalorder %s598_s28, %s451_s6  ;;  %p456_p9 = scmp.lt.u32.totalorder %s598_s28, %s644_s3 }
  0xfb   : > { %p457_p10 = scmp.lt.u32.totalorder %s455_s9, %s451_s6  ;;  %p459_p12 = scmp.lt.u32.totalorder %s451_s6, %s598_s28 }
  0xfc   : > { %p453_p7 = pnand %p452_p4, %p562_p5 }
  0xfd   : > { %p458_p11 = por %p457_p10, %p456_p9 }
  0xfe   : > { %p454_p8 = pneg %p453_p7 }
  0xff   : > { %p460_p13 = por %p459_p12, %p458_p11 }
 0x101   : > { %p461_p0 = pnand %p460_p13, %p454_p8 }
 0x103   : > { %464 = shalt.err (!%p461_p0)
}
 0x104   : > { %s502_s17 = smov 128   ;;  %s503_s19 = smov 8  }
 0x105   : > { %392 = dma.vmem_to_hbm [thread:$0]  (%p562_p5), %s593_s24, 512, %s598_s28, %s600_s16, %s502_s17, %s502_s17, %s503_s19  }
 0x106 PF: > { %p398_p1 = scmp.ge.s32.totalorder %s499_s15, 2  ;;  %s307_s20 = sand.u32 1, %s487_s12  }
 0x107   : > { %s308_s25 = scalar_lea.sflag [#allocation3], %s307_s20 }
 0x108   : > { %p395_p2 = pnand %p398_p1, %p566_p6 }
 0x10a   : > { %482 = dma.done.wait (!%p395_p2), %s308_s25, 512  }
 0x10b   : > { %484 = vsyncadd (!%p395_p2), %s308_s25, 4294966784  ;;  %p13_p3 = scmp.ge.s32.totalorder %s549_s18, 6   ;;  %s647_s12 = smov %s491_s13 }
 0x10c   : > { %s648_s13 = smov %s495_s14  ;;  %s649_s14 = smov %s560_s21 }
 0x10d   : > { %s650_s15 = smov %s549_s18  ;;  %15 = sbr.rel (!%p13_p3) target bundleno = 3 (0x3), region = 67 }
 0x114   :  { %313 = vsyncpa [#allocation3], 1 }
 0x115   :  { %315 = vsyncpa [#allocation3 + $0x1], 1 }

</bundles_post_ra>
